<compile_context>
chip_gen: v6e
topology: v6e:2x2x1
jax: 0.10.0
libtpu: 0.0.40
codegen_flags: <defaults>
</compile_context>

<pallas_src>
import math

import jax
import jax.numpy as jnp
from jax.experimental import pallas as pl
from jax.experimental.pallas import tpu as pltpu


# ------------------------------ constants ------------------------------------

_MAX_BLOCK_BYTES = 4 * 1024 * 1024     # per-block buffer; in+out double-buffered
                                       # -> <= 16 MiB of VMEM in flight
_VMEM_LIMIT_BYTES = 32 * 1024 * 1024   # explicit scoped-VMEM limit; safe on
                                       # v5e/v6e (128 MiB phys) and v7x (64 MiB)
_LANE_CANDIDATES = (1024, 512, 256, 128)


# ------------------------------ kernels ---------------------------------------

def _sigmoid_kernel(x_ref, o_ref):
    # Elementwise sigmoid on a lane-dense (rows, lanes) tile.
    # sigmoid(x) = 0.5 * tanh(0.5*x) + 0.5  -> one EUP transcendental + a VPU
    # fma (instead of exp + divide).  Compute in f32 for parity with PyTorch.
    x = x_ref[...].astype(jnp.float32)
    o_ref[...] = (0.5 * jnp.tanh(0.5 * x) + 0.5).astype(o_ref.dtype)


def _softmax_kernel(x_ref, o_ref):
    # x_ref / o_ref tile: (C, tile_h).  Numerically-stable softmax over axis 0
    # (the channel axis).  HBM-bound, so the exact divide is free.
    x = x_ref[...].astype(jnp.float32)
    m = jnp.max(x, axis=0, keepdims=True)
    e = jnp.exp(x - m)
    s = jnp.sum(e, axis=0, keepdims=True)
    o_ref[...] = (e / s).astype(o_ref.dtype)


# ------------------------------ wrappers --------------------------------------

def _sigmoid_forward(output_features: jax.Array) -> jax.Array:
    # squeeze(-1) is glue; sigmoid is elementwise so order is irrelevant.
    assert output_features.shape[-1] == 1
    out_shape = output_features.shape[:-1]               # e.g. (B, N, M)
    total = math.prod(out_shape)
    itemsize = jnp.dtype(output_features.dtype).itemsize

    # Lane-dense slab: a row-major merge/split of contiguous dims is a
    # metadata-only reshape in XLA (no extra HBM pass).
    lanes = None
    for cand in _LANE_CANDIDATES:
        if total % cand == 0:
            lanes = cand
            break
    if lanes is None:
        # Awkward element count: keep the natural minor dim.  Still streams
        # with cdiv tiling (narrow/masked stores, but never one giant block).
        lanes = out_shape[-1]
    rows = total // lanes
    flat = output_features.reshape(rows, lanes)

    # Budget-derived row tile (multiple of 8 whenever it is < rows), cdiv grid
    # so ragged last blocks are masked instead of forcing a single huge block.
    budget_rows = max(8, (_MAX_BLOCK_BYTES // (lanes * itemsize)) // 8 * 8)
    tile_rows = rows if rows <= budget_rows else budget_rows
    # v7x has 2 TensorCores: if everything landed in one block but there is
    # enough data to split, give the grid >= 2 steps.
    if tile_rows == rows and rows >= 16:
        tile_rows = max(8, ((rows + 1) // 2 + 7) // 8 * 8)
    grid = (pl.cdiv(rows, tile_rows),)

    out = pl.pallas_call(
        _sigmoid_kernel,
        out_shape=jax.ShapeDtypeStruct((rows, lanes), output_features.dtype),
        grid=grid,
        in_specs=[pl.BlockSpec((tile_rows, lanes), lambda i: (i, 0))],
        out_specs=pl.BlockSpec((tile_rows, lanes), lambda i: (i, 0)),
        compiler_params=pltpu.CompilerParams(
            dimension_semantics=("parallel",),
            vmem_limit_bytes=_VMEM_LIMIT_BYTES),
    )(flat)
    return out.reshape(out_shape)


def _softmax_forward(output_features: jax.Array) -> jax.Array:
    B, C, H, W = output_features.shape
    assert W >= 2, "softmax path selects [..., 1]; requires W >= 2"
    itemsize = jnp.dtype(output_features.dtype).itemsize

    # Hoist the [:, :, :, 1] select in front of the softmax: softmax over the
    # channel axis at w==1 depends only on x[..., 1].  Single XLA strided
    # slice; the kernel then reads/writes only B*C*H elements, in place
    # (no transposes, output emitted directly in (B, C, H)).
    # TODO(synk): fold this select into the kernel's input DMA (size-1 W block
    # via an index-mapped W axis) once Mosaic reliably accepts a non-128
    # minormost block for this shape.
    xs = output_features[:, :, :, 1]                      # (B, C, H)

    # Budget-derived lane tile: multiple of 128 when < H, else the full H
    # (both satisfy the (8,128) block rule).  Ragged last block is masked.
    budget_h = max(128, (_MAX_BLOCK_BYTES // (C * itemsize)) // 128 * 128)
    tile_h = H if H <= budget_h else budget_h
    grid = (B, pl.cdiv(H, tile_h))

    out = pl.pallas_call(
        _softmax_kernel,
        out_shape=jax.ShapeDtypeStruct((B, C, H), output_features.dtype),
        grid=grid,
        # Batch dim squeezed (None): kernel sees (C, tile_h); C equals the
        # full array dim so the sublane constraint is satisfied for any C.
        in_specs=[pl.BlockSpec((None, C, tile_h), lambda b, h: (b, 0, h))],
        out_specs=pl.BlockSpec((None, C, tile_h), lambda b, h: (b, 0, h)),
        compiler_params=pltpu.CompilerParams(
            dimension_semantics=("parallel", "parallel"),
            vmem_limit_bytes=_VMEM_LIMIT_BYTES),
    )(xs)
    return out                                            # (B, C, H)


class DecoderOutputActivationAdapter:
    """JAX/Pallas port of the PyTorch DecoderOutputActivationAdapter."""

    def __init__(self, activation: str):
        if activation == 'sigmoid':
            self.forward_func = _sigmoid_forward
        elif activation == 'softmax':
            self.forward_func = _softmax_forward
        else:
            raise NotImplementedError(f'Activation: {activation}')

    def __call__(self, output_features: jax.Array) -> jax.Array:
        return self.forward_func(output_features)


# -------------------------------- main ----------------------------------------

if __name__ == "__main__":
    key = jax.random.PRNGKey(0)
    k1, k2, k3, k4 = jax.random.split(key, 4)

    sig_adapter = DecoderOutputActivationAdapter('sigmoid')
    sm_adapter = DecoderOutputActivationAdapter('softmax')

    # --- small shapes (match the original module's test sizes) ---
    x_sig = jax.random.normal(k1, (2, 8, 16, 1), dtype=jnp.float32)
    x_sm = jax.random.normal(k2, (2, 4, 16, 16), dtype=jnp.float32)

    out_sig = jax.block_until_ready(sig_adapter(x_sig))
    out_sm = jax.block_until_ready(sm_adapter(x_sm))

    ref_sig = jax.nn.sigmoid(x_sig)[..., 0]                   # squeeze(-1)
    ref_sm = jax.nn.softmax(x_sm, axis=1)[:, :, :, 1]

    assert out_sig.shape == (2, 8, 16)
    assert out_sm.shape == (2, 4, 16)
    assert jnp.allclose(out_sig, ref_sig, atol=1e-5, rtol=1e-5)
    assert jnp.allclose(out_sm, ref_sm, atol=1e-5, rtol=1e-5)

    # --- medium shapes (exercise the multi-block / tiled grid paths) ---
    x_sig2 = jax.random.normal(k3, (2, 8, 128, 1), dtype=jnp.float32)
    x_sm2 = jax.random.normal(k4, (4, 4, 256, 16), dtype=jnp.float32)

    out_sig2 = jax.block_until_ready(sig_adapter(x_sig2))
    out_sm2 = jax.block_until_ready(sm_adapter(x_sm2))

    ref_sig2 = jax.nn.sigmoid(x_sig2)[..., 0]
    ref_sm2 = jax.nn.softmax(x_sm2, axis=1)[:, :, :, 1]

    assert out_sig2.shape == (2, 8, 128)
    assert out_sm2.shape == (4, 4, 256)
    assert jnp.allclose(out_sig2, ref_sig2, atol=1e-5, rtol=1e-5)
    assert jnp.allclose(out_sm2, ref_sm2, atol=1e-5, rtol=1e-5)

    print("KERNEL_OK")
</pallas_src>

<mosaic_0001>
module attributes {stable_mosaic.version = 11 : i64} {
  func.func @_sigmoid_kernel(%arg0: i32, %arg1: memref<1x256xf32, #tpu.memory_space<vmem>>, %arg2: memref<1x256xf32, #tpu.memory_space<vmem>>) attributes {dimension_semantics = [#tpu.dimension_semantics<parallel>], iteration_bounds = array<i64: 1>, scalar_prefetch = 0 : i64, scratch_operands = 0 : i64, tpu.core_type = #tpu.core_type<tc>, window_params = [{transform_indices = @transform_0, window_bounds = array<i64: 1, 256>}, {transform_indices = @transform_1, window_bounds = array<i64: 1, 256>}]} {
    %c0 = arith.constant 0 : index
    %c0_0 = arith.constant 0 : index
    %0 = vector.load %arg1[%c0, %c0_0] : memref<1x256xf32, #tpu.memory_space<vmem>>, vector<1x256xf32>
    %cst = arith.constant 5.000000e-01 : f32
    %1 = vector.broadcast %cst : f32 to vector<1x256xf32>
    %2 = arith.mulf %1, %0 : vector<1x256xf32>
    %3 = math.tanh %2 : vector<1x256xf32>
    %cst_1 = arith.constant 5.000000e-01 : f32
    %4 = vector.broadcast %cst_1 : f32 to vector<1x256xf32>
    %5 = arith.mulf %4, %3 : vector<1x256xf32>
    %cst_2 = arith.constant 5.000000e-01 : f32
    %6 = vector.broadcast %cst_2 : f32 to vector<1x256xf32>
    %7 = arith.addf %5, %6 : vector<1x256xf32>
    %c0_3 = arith.constant 0 : index
    %c0_4 = arith.constant 0 : index
    %8 = vector.load %arg2[%c0_3, %c0_4] : memref<1x256xf32, #tpu.memory_space<vmem>>, vector<1x256xf32>
    tpu.vector_store %arg2[%c0_3, %c0_4], %7 {strides = array<i32>} : memref<1x256xf32, #tpu.memory_space<vmem>>, vector<1x256xf32>,
    return
  }
  func.func @transform_0(%arg0: i32) -> (i32, i32) {
    %c0_i32 = arith.constant 0 : i32
    %c0_i32_0 = arith.constant 0 : i32
    return %arg0, %c0_i32 : i32, i32
  }
  func.func @transform_1(%arg0: i32) -> (i32, i32) {
    %c0_i32 = arith.constant 0 : i32
    %c0_i32_0 = arith.constant 0 : i32
    return %arg0, %c0_i32 : i32, i32
  }
}

</mosaic_0001>

<bundles_post_ra>
// kernel: tpu_custom_call.1
= control target key start
LH: loop header
LB: loop body
LE: loop exit
PB: predicated region body
PF: predicated region fallthrough
CT: control target
= control target key end

     0   :  { %6 = vsyncpa [#allocation3], 0  ;;  %s112_s0 = inlined_call_operand.hbm [shape: f32[1,256], index: 0, kind: input, shape index: {}]   ;;  %s113_s1 = inlined_call_operand.hbm [shape: f32[1,256], index: 1, kind: output, shape index: {}]  }
   0x1   :  { %7 = vsyncpa [#allocation4], 0  ;;  %s94_s6 = smov [#allocation2]  }
   0x2   :  { %s14_s7 = sshll.u32 %s94_s6, 4  ;;  %s15_s7 = int_to_ptr.vmem [resolvable:$true] %s14_s7 }
   0x3   :  { %s58_s8 = scalar_lea.vmem %s15_s7, 32  ;;  %p63_p1 = scmp.lt.s32.totalorder %s15_s7, %s15_s7 }
   0x4   :  { %p59_p0 = scmp.ne.s32.totalorder %s15_s7, %s58_s8  ;;  %p64_p2 = scmp.lt.s32.totalorder %s58_s8, %s58_s8 }
   0x6   :  { %p65_p3 = por %p64_p2, %p63_p1 }
   0x8   :  { %p66_p4 = pnand %p65_p3, %p59_p0 }
   0xa   :  { %69 = shalt.err (!%p66_p4)
}
   0xb   :  { %17 = dma.hbm_to_vmem [thread:$0]  %s112_s0, 32, %s15_s7, [#allocation3]  }
   0xc   :  { %90 = dma.done.wait [#allocation3], 32  }
   0xd   :  { %91 = vsyncadd [#allocation3], 4294967264  ;;  %v21_v0 = vld [vmem:[#allocation2] sm:$0x3]  ;;  %v26_v2 = vlaneseq  ;;  %s95_s11 = smov [#allocation5]  }
   0xe   :  { %v22_v1 = vmul.f32 0.5, %v21_v0  ;;  %s37_s12 = sshll.u32 %s95_s11, 4  ;;  %s38_s12 = int_to_ptr.vmem [resolvable:$true] %s37_s12 }
   0xf   :  { %vm28_vm0 = vcmp.lt.s32.totalorder %v26_v2, 256  ;;  %s70_s13 = scalar_lea.vmem %s38_s12, 32  ;;  %p75_p6 = scmp.lt.s32.totalorder %s38_s12, %s38_s12 }
  0x10   :  { %48 = vtanh.f32 %v22_v1  ;;  %p71_p5 = scmp.ne.s32.totalorder %s38_s12, %s70_s13  ;;  %p76_p7 = scmp.lt.s32.totalorder %s70_s13, %s70_s13 }
  0x12   :  { %p77_p8 = por %p76_p7, %p75_p6 }
  0x14   :  { %p78_p9 = pnand %p77_p8, %p71_p5 }
  0x1d   :  { %v49_v3 = vpop.eup %48 }
  0x1e   :  { %v24_v4 = vmul.f32 0.5, %v49_v3 }
  0x20   :  { %v25_v5 = vadd.f32 0.5, %v24_v4 }
  0x22   :  { %30 = vst.msk [vmem:[#allocation5] sm:$0x3] %vm28_vm0, %v25_v5 }
  0x23   :  { %81 = shalt.err (!%p78_p9)
}
  0x24   :  { %40 = dma.vmem_to_hbm [thread:$0]  %s38_s12, 32, %s113_s1, [#allocation4]  }
  0x25   :  { %92 = dma.done.wait [#allocation4], 32  }
  0x26   :  { %93 = vsyncadd [#allocation4], 4294967264 }
  0x27   :  { %44 = vsyncpa [#allocation3], 1 }
  0x28   :  { %45 = vsyncpa [#allocation4], 1 }

</bundles_post_ra>
